<compile_context>
chip_gen: v7x
topology: tpu7x:2x2x1
jax: 0.10.0
libtpu: 0.0.40
codegen_flags: <defaults>
</compile_context>

<pallas_src>
import jax
import jax.numpy as jnp
from jax.experimental import pallas as pl
from jax.experimental.pallas import tpu as pltpu


def make_divisible(value, divisor=8, min_value=None, min_ratio=0.9):
    """Same as mmseg/mmcv make_divisible."""
    if min_value is None:
        min_value = divisor
    new_value = max(min_value, int(value + divisor / 2) // divisor * divisor)
    if new_value < min_ratio * value:
        new_value += divisor
    return new_value


def _hsigmoid(v):
    # HSigmoid(bias=3.0, divisor=6.0, min=0, max=1) — multiply by constant, not divide.
    return jnp.clip((v + 3.0) * (1.0 / 6.0), 0.0, 1.0)


def _gated_conv3_kernel(x_ref, w3g_ref, b3_ref, o_ref):
    # x_ref:   (1, C, T)    f32 activation tile (NCHW-native; HW tile on the lane axis)
    # w3g_ref: (1, Cout, C) bf16 per-image gate-folded conv3 weight (g ⊙ W3)
    # b3_ref:  (Cout, 1)    f32 conv3 bias
    # o_ref:   (1, Cout, T) f32 output tile
    x = x_ref[0].astype(jnp.bfloat16)                            # (C, T)
    w = w3g_ref[0]                                               # (Cout, C)
    y = jnp.dot(w, x, preferred_element_type=jnp.float32)        # MXU -> (Cout, T) f32
    y = y + b3_ref[...]                                          # lane-broadcast bias
    o_ref[0] = _hsigmoid(y).astype(o_ref.dtype)                  # lane-dense store (T % 128 == 0)


def _choose_hw_tile(hw, c, cout, vmem_budget_bytes=16 << 20):
    """Largest multiple-of-128 divisor of HW whose double-buffered f32 tile footprint fits."""
    if hw % 128 != 0:
        # Full-extent block is always a legal block shape (handles odd spatial sizes).
        return hw
    best = 128
    t = 128
    while t <= hw:
        if hw % t == 0:
            # x tile + out tile, f32, each double-buffered by the pipeline.
            footprint = 2 * (c * t * 4 + cout * t * 4)
            if footprint <= vmem_budget_bytes:
                best = t
        t *= 2
    return best


def se_layer_in2out(x_nchw, params):
    """x_nchw: (N, C, H, W) float32.  Returns (N, Cout, H, W) float32."""
    w1, b1, w2, b2, w3, b3 = params
    N, C, H, W = x_nchw.shape
    HW = H * W
    Cout = w3.shape[0]

    # NCHW-native: only a (free) reshape, no transposes.
    x_flat = x_nchw.reshape(N, C, HW)

    # --- squeeze + excitation (tiny N x C work, hoisted out of the Pallas kernel) ---
    s = jnp.mean(x_flat, axis=2)                                 # (N, C)
    h = jnp.maximum(s @ w1.T + b1, 0.0)                          # (N, mid)
    g = _hsigmoid(h @ w2.T + b2)                                 # (N, C)

    # Fold the gate into the conv3 weight:  (x * g) @ W3^T == x @ (g ⊙ W3)^T
    w3g = (w3[None, :, :] * g[:, None, :]).astype(jnp.bfloat16)  # (N, Cout, C)
    b3c = b3.reshape(Cout, 1).astype(jnp.float32)

    T = _choose_hw_tile(HW, C, Cout)
    grid = (N, HW // T)

    cost = pl.CostEstimate(
        flops=2 * N * HW * C * Cout,
        transcendentals=0,
        bytes_accessed=N * HW * C * 4 + N * HW * Cout * 4 + N * Cout * C * 2,
    )

    out = pl.pallas_call(
        _gated_conv3_kernel,
        out_shape=jax.ShapeDtypeStruct((N, Cout, HW), jnp.float32),
        grid_spec=pltpu.PrefetchScalarGridSpec(
            num_scalar_prefetch=0,
            grid=grid,
            in_specs=[
                pl.BlockSpec((1, C, T), lambda n, t: (n, 0, t)),       # activation tile
                pl.BlockSpec((1, Cout, C), lambda n, t: (n, 0, 0)),    # per-image folded W3
                pl.BlockSpec((Cout, 1), lambda n, t: (0, 0)),          # bias
            ],
            out_specs=pl.BlockSpec((1, Cout, T), lambda n, t: (n, 0, t)),
        ),
        compiler_params=pltpu.CompilerParams(
            dimension_semantics=("parallel", "parallel"),
            vmem_limit_bytes=48 * 1024 * 1024,
        ),
        cost_estimate=cost,
    )(x_flat, w3g, b3c)

    return out.reshape(N, Cout, H, W)


def _reference(x_nchw, params):
    """Pure-JAX (f32) reference of the PyTorch forward."""
    w1, b1, w2, b2, w3, b3 = params
    s = jnp.mean(x_nchw, axis=(2, 3))                               # (N, C)
    h = jnp.maximum(s @ w1.T + b1, 0.0)                             # (N, mid)
    g = _hsigmoid(h @ w2.T + b2)                                    # (N, C)
    xs = x_nchw * g[:, :, None, None]                               # (N, C, H, W)
    y = jnp.einsum("nchw,oc->nohw", xs, w3) + b3[None, :, None, None]
    return _hsigmoid(y)


def init_params(key, in_channels, out_channels, ratio=16):
    mid = make_divisible(in_channels // ratio, 8)
    k1, k2, k3, k4, k5, k6 = jax.random.split(key, 6)
    scale = 0.5
    w1 = scale * jax.random.normal(k1, (mid, in_channels), jnp.float32)
    b1 = scale * jax.random.normal(k2, (mid,), jnp.float32)
    w2 = scale * jax.random.normal(k3, (in_channels, mid), jnp.float32)
    b2 = scale * jax.random.normal(k4, (in_channels,), jnp.float32)
    w3 = scale * jax.random.normal(k5, (out_channels, in_channels), jnp.float32)
    b3 = scale * jax.random.normal(k6, (out_channels,), jnp.float32)
    return (w1, b1, w2, b2, w3, b3)


if __name__ == "__main__":
    key = jax.random.PRNGKey(0)
    kx, kp = jax.random.split(key)

    N, C, H, W = 2, 4, 16, 16
    Cout = 4
    x = jax.random.normal(kx, (N, C, H, W), jnp.float32)
    params = init_params(kp, in_channels=C, out_channels=Cout, ratio=16)

    y = jax.block_until_ready(se_layer_in2out(x, params))
    y_ref = jax.block_until_ready(_reference(x, params))

    assert y.shape == (N, Cout, H, W)
    # bf16 MXU operands + f32 accumulation; HSigmoid clamps the range, so a loose
    # tolerance vs the f32 reference is appropriate.
    assert jnp.allclose(y, y_ref, atol=2e-2, rtol=2e-2), "mismatch vs reference"
    print("KERNEL_OK")
</pallas_src>

<mosaic_0001>
module attributes {stable_mosaic.version = 11 : i64} {
  func.func @_gated_conv3_kernel(%arg0: i32, %arg1: i32, %arg2: memref<1x4x256xf32, #tpu.memory_space<vmem>>, %arg3: memref<1x4x4xbf16, #tpu.memory_space<vmem>>, %arg4: memref<4x1xf32, #tpu.memory_space<vmem>>, %arg5: memref<1x4x256xf32, #tpu.memory_space<vmem>>) attributes {dimension_semantics = [#tpu.dimension_semantics<parallel>, #tpu.dimension_semantics<parallel>], iteration_bounds = array<i64: 2, 1>, scalar_prefetch = 0 : i64, scratch_operands = 0 : i64, tpu.core_type = #tpu.core_type<tc>, window_params = [{transform_indices = @transform_0, window_bounds = array<i64: 1, 4, 256>}, {transform_indices = @transform_1, window_bounds = array<i64: 1, 4, 4>}, {pipeline_mode = #tpu.pipeline_mode<synchronous>, transform_indices = @transform_2, window_bounds = array<i64: 4, 1>}, {transform_indices = @transform_3, window_bounds = array<i64: 1, 4, 256>}]} {
    %c0 = arith.constant 0 : index
    %c0_0 = arith.constant 0 : index
    %c0_1 = arith.constant 0 : index
    %0 = vector.load %arg2[%c0, %c0_0, %c0_1] : memref<1x4x256xf32, #tpu.memory_space<vmem>>, vector<1x4x256xf32>
    %1 = vector.shape_cast %0 : vector<1x4x256xf32> to vector<4x256xf32>
    %2 = arith.truncf %1 : vector<4x256xf32> to vector<4x256xbf16>
    %c0_2 = arith.constant 0 : index
    %c0_3 = arith.constant 0 : index
    %c0_4 = arith.constant 0 : index
    %3 = vector.load %arg3[%c0_2, %c0_3, %c0_4] : memref<1x4x4xbf16, #tpu.memory_space<vmem>>, vector<1x4x4xbf16>
    %4 = vector.shape_cast %3 : vector<1x4x4xbf16> to vector<4x4xbf16>
    %cst = arith.constant dense<0.000000e+00> : vector<4x256xf32>
    %5 = tpu.matmul %4, %2, %cst {dimension_numbers = #tpu.dot_dimension_numbers<[1], [0], [0], [1], [0, 0, 1, 1], [], []>} : vector<4x4xbf16>, vector<4x256xbf16>, vector<4x256xf32> -> vector<4x256xf32>
    %c0_5 = arith.constant 0 : index
    %c0_6 = arith.constant 0 : index
    %6 = vector.load %arg4[%c0_5, %c0_6] : memref<4x1xf32, #tpu.memory_space<vmem>>, vector<4x1xf32>
    %7 = vector.broadcast %6 : vector<4x1xf32> to vector<4x256xf32>
    %8 = arith.addf %5, %7 : vector<4x256xf32>
    %cst_7 = arith.constant 3.000000e+00 : f32
    %9 = vector.broadcast %cst_7 : f32 to vector<4x256xf32>
    %10 = arith.addf %8, %9 : vector<4x256xf32>
    %cst_8 = arith.constant 0.166666672 : f32
    %11 = vector.broadcast %cst_8 : f32 to vector<4x256xf32>
    %12 = arith.mulf %10, %11 : vector<4x256xf32>
    %cst_9 = arith.constant 0.000000e+00 : f32
    %cst_10 = arith.constant 1.000000e+00 : f32
    %13 = vector.broadcast %cst_9 : f32 to vector<4x256xf32>
    %14 = arith.maximumf %13, %12 : vector<4x256xf32>
    %15 = vector.broadcast %cst_10 : f32 to vector<4x256xf32>
    %16 = arith.minimumf %15, %14 : vector<4x256xf32>
    %c0_11 = arith.constant 0 : index
    %c0_12 = arith.constant 0 : index
    %c0_13 = arith.constant 0 : index
    %17 = vector.load %arg5[%c0_11, %c0_12, %c0_13] : memref<1x4x256xf32, #tpu.memory_space<vmem>>, vector<1x4x256xf32>
    %18 = vector.shape_cast %17 : vector<1x4x256xf32> to vector<4x256xf32>
    %19 = vector.shape_cast %16 : vector<4x256xf32> to vector<1x4x256xf32>
    tpu.vector_store %arg5[%c0_11, %c0_12, %c0_13], %19 {strides = array<i32>} : memref<1x4x256xf32, #tpu.memory_space<vmem>>, vector<1x4x256xf32>,
    return
  }
  func.func @transform_0(%arg0: i32, %arg1: i32) -> (i32, i32, i32) {
    %c0_i32 = arith.constant 0 : i32
    %c0_i32_0 = arith.constant 0 : i32
    return %arg0, %c0_i32, %arg1 : i32, i32, i32
  }
  func.func @transform_1(%arg0: i32, %arg1: i32) -> (i32, i32, i32) {
    %c0_i32 = arith.constant 0 : i32
    %c0_i32_0 = arith.constant 0 : i32
    %c0_i32_1 = arith.constant 0 : i32
    return %arg0, %c0_i32, %c0_i32_0 : i32, i32, i32
  }
  func.func @transform_2(%arg0: i32, %arg1: i32) -> (i32, i32) {
    %c0_i32 = arith.constant 0 : i32
    %c0_i32_0 = arith.constant 0 : i32
    %c0_i32_1 = arith.constant 0 : i32
    return %c0_i32, %c0_i32_0 : i32, i32
  }
  func.func @transform_3(%arg0: i32, %arg1: i32) -> (i32, i32, i32) {
    %c0_i32 = arith.constant 0 : i32
    %c0_i32_0 = arith.constant 0 : i32
    return %arg0, %c0_i32, %arg1 : i32, i32, i32
  }
}

</mosaic_0001>

<bundles_post_ra>
// kernel: tpu_custom_call.1
= control target key start
LH: loop header
LB: loop body
LE: loop exit
PB: predicated region body
PF: predicated region fallthrough
CT: control target
= control target key end

     0   :  { %8 = vsyncpa [#allocation3], 0  ;;  %s822_s0 = inlined_call_operand.hbm [shape: f32[2,4,256], index: 0, kind: input, shape index: {}]   ;;  %s823_s1 = inlined_call_operand.vmem [shape: bf16[2,4,4], index: 1, kind: input, shape index: {}]   ;;  %s824_s2 = inlined_call_operand.vmem [shape: f32[4,1], index: 2, kind: input, shape index: {}]   ;;  %s825_s3 = inlined_call_operand.hbm [shape: f32[2,4,256], index: 3, kind: output, shape index: {}]  }
   0x1   :  { %10 = vsyncpa [#allocation3 + $0x1], 0 }
   0x2   :  { %11 = vsyncpa [#allocation4], 0 }
   0x3   :  { %13 = vsyncpa [#allocation4 + $0x1], 0  ;;  %s638_s12 = smov 0   ;;  %s640_s13 = smov 0  }
   0x4   :  { %s642_s14 = smov 0   ;;  %s644_s15 = smov 0  }
   0x5   :  { %s646_s16 = smov 0   ;;  %s648_s17 = smov 0  }
   0x6 LB: > { %s416_s18 = sadd.s32 4294967295, %s613_s17   ;;  %s417_s19 = sadd.s32 4294967294, %s613_s17   ;;  %s613_s17 = sphi %s648_s17, %s19_s17   ;;  %s609_s16 = sphi %s646_s16, %s841_s16   ;;  %s605_s15 = sphi %s644_s15, %s840_s15   ;;  %s601_s14 = sphi %s642_s14, %s839_s14   ;;  %s597_s13 = sphi %s640_s13, %s838_s13   ;;  %s593_s12 = sphi %s638_s12, %s837_s12  }
   0x7   : > { %s31_s20 = sadd.s32 1, %s609_s16  ;;  %s40_s21 = sadd.s32 1, %s601_s14 }
   0x8   : > { %p33_p0 = scmp.ge.s32.totalorder %s31_s20, 2  ;;  %p47_p1 = scmp.ne.s32.totalorder %s601_s14, %s597_s13 }
   0x9   : > { %p48_p2 = scmp.eq.s32.totalorder %s613_s17, 0  ;;  %p53_p3 = scmp.ne.s32.totalorder %s597_s13, %s593_s12 }
   0xa   : > { %s843_s20 = smov (%p33_p0, %s31_s20), 0  ;;  %p54_p5 = scmp.eq.s32.totalorder %s416_s18, 0 }
   0xb   : > { %p679_p4 = por %p48_p2, %p47_p1  ;;  %s35_s23 = ssub.s32 %s609_s16, %s843_s20 }
   0xc   : > { %p126_p6 = scmp.eq.s32.totalorder %s416_s18, 1  ;;  %p38_p7 = scmp.eq.s32.totalorder %s35_s23, 0 }
   0xd   : > { %p685_p8 = por %p54_p5, %p53_p3  ;;  %p132_p10 = scmp.eq.s32.totalorder %s417_s19, 1 }
   0xe   : > { %p689_p9 = por %p126_p6, %p47_p1  ;;  %p448_p13 = scmp.lt.s32.totalorder %s613_s17, 2 }
   0xf   : > { %s694_s26 = scalar_select %p38_p7, %s601_s14, %s40_s21  }
  0x10   : > { %s829_s25 = scalar_select %p689_p9, 1, 0 }
  0x11   : > { %p696_p11 = por %p132_p10, %p53_p3  ;;  %s155_s28 = sand.u32 1, %s601_s14  }
  0x12   : > { %s420_s29 = sshll.u32 %s155_s28, 3  ;;  %s434_s30 = sshll.u32 %s609_s16, 7 }
  0x13   : > { %s830_s27 = scalar_select %p696_p11, 1, 0 }
  0x14   : > { %s707_s6 = scalar_lea.hbm %s822_s0, %s434_s30  ;;  %s159_s7 = scalar_lea.vmem [#allocation2], %s420_s29 }
  0x15   : > { %s169_s8 = sshll.u32 %s159_s7, 4  ;;  %p713_p0 = pnand %p448_p13, %p679_p4  ;;  %s709_s8 = int_to_ptr.vmem [resolvable:$true] %s169_s8 }
  0x16   : > { %s156_s10 = scalar_lea.sflag [#allocation3], %s155_s28  ;;  %s501_s11 = scalar_lea.hbm %s707_s6, 128 }
  0x17   : > { %p502_p3 = scmp.ne.s32.totalorder %s707_s6, %s501_s11  ;;  %p503_p5 = pneg %p713_p0 }
  0x18   : > { %s506_s21 = scalar_lea.hbm %s822_s0, 256  ;;  %p507_p4 = scmp.lt.u32.totalorder %s707_s6, %s822_s0 }
  0x19   : > { %p504_p6 = pnand %p503_p5, %p502_p3  ;;  %p508_p10 = scmp.lt.u32.totalorder %s506_s21, %s501_s11 }
  0x1a   : > { %p510_p12 = scmp.lt.u32.totalorder %s501_s11, %s707_s6 }
  0x1b   : > { %p505_p7 = pneg %p504_p6  ;;  %p509_p13 = por %p508_p10, %p507_p4 }
  0x1d   : > { %p511_p1 = por %p510_p12, %p509_p13 }
  0x1f   : > { %p512_p2 = pnand %p511_p1, %p505_p7 }
  0x21   : > { %515 = shalt.err (!%p512_p2)
}
  0x22   : > { %s516_s28 = scalar_lea.vmem %s709_s8, 128  ;;  %s615_s29 = smov [#allocation2]  }
  0x23   : > { %p517_p3 = scmp.ne.s32.totalorder %s709_s8, %s516_s28  ;;  %s521_s30 = sshll.u32 %s615_s29, 4  ;;  %s522_s30 = int_to_ptr.vmem [resolvable:$false] %s521_s30 }
  0x24   : > { %s523_s4 = scalar_lea.vmem %s522_s30, 256  ;;  %p524_p9 = scmp.lt.s32.totalorder %s709_s8, %s522_s30 }
  0x25   : > { %p519_p6 = pnand %p517_p3, %p503_p5  ;;  %p525_p4 = scmp.lt.s32.totalorder %s523_s4, %s516_s28 }
  0x27   : > { %p520_p11 = pneg %p519_p6  ;;  %p526_p10 = por %p525_p4, %p524_p9 }
  0x29   : > { %p527_p12 = pnand %p526_p10, %p520_p11 }
  0x2b   : > { %530 = shalt.err (!%p527_p12)
}
  0x2c   : > { %443 = dma.hbm_to_vmem [thread:$0]  (!%p713_p0), %s707_s6, 128, %s709_s8, %s156_s10  }
  0x2d   : > { %p832_p1 = scmp.lt.s32.totalorder %s613_s17, 3  ;;  %p833_p2 = scmp.ge.s32.totalorder %s613_s17, 1 }
  0x2f   : > { %p182_p5 = pnand %p833_p2, %p832_p1 }
  0x30   : > { %s749_s5 = sand.u32 (!%p182_p5), 1, %s597_s13  }
  0x31   : > { %185 = sbr.rel (%p182_p5) target bundleno = 305 (0x131), region = 32  ;;  %s424_s7 = sshll.u32 (!%p182_p5), %s749_s5, 3 }
  0x32   : > { %s188_s11 = scalar_lea.sflag (!%p182_p5), [#allocation3], %s749_s5  ;;  %s191_s9 = scalar_lea.vmem (!%p182_p5), [#allocation2], %s424_s7 }
  0x38   : > { %584 = dma.done.wait (%p685_p8), %s188_s11, 128  }
  0x39   : > { %586 = vsyncadd (%p685_p8), %s188_s11, 4294967168  ;;  %p219_p9 = scmp.lt.s32.totalorder %s605_s15, 1  ;;  %v616_v0 = vmov 0   ;;  %v225_v1 = vld [vmem:[%s191_s9] sm:$0xff]  ;;  %vm242_vm0 = vcmask 1041408   ;;  %vm238_vm1 = vcmask 31744  }
  0x3a   : > { %281 = vmatprep.mubr.bf16.mxu0 %v616_v0  ;;  %499 = vset.pattern.permute.xlu0 %v616_v0  ;;  %v232_v2 = vld [vmem:[%s824_s2] sm:$0xf]  ;;  %v227_v3 = vcombine.high %v225_v1, %v225_v1  ;;  %v229_v4 = vpack.c.bf16 %v225_v1, %v225_v1  ;;  %s435_s22 = sshll.u32 %s605_s15, 7  ;;  %s217_s23 = scalar_lea.vmem [#allocation5], %s424_s7 }
  0x3b   : > { %s220_s6 = scalar_select %p219_p9, %s605_s15, 1  ;;  %235 = vperm.xlu0 %499, %v232_v2  }
  0x3c   : > { %v230_v5 = vpack.c.bf16 %v227_v3, %v227_v3  ;;  %v244_v6 = vsel %vm242_vm0, %v229_v4, 0  ;;  %s320_s28 = sshll.u32 %s217_s23, 4  ;;  %s773_s4 = scalar_lea.hbm %s825_s3, %s435_s22  ;;  %s775_s28 = int_to_ptr.vmem [resolvable:$true] %s320_s28 }
  0x3d   : > { %s426_s8 = sshll.u32 %s220_s6, 1  ;;  %s304_s11 = scalar_lea.sflag [#allocation4], %s749_s5 }
  0x3e   : > { %s222_s21 = scalar_lea.vmem %s823_s1, %s426_s8  ;;  %427 = vmatprep.subr.msk.bf16.mxu0 %vm242_vm0, %v230_v5  ;;  %s531_s9 = scalar_lea.vmem %s775_s28, 128 }
  0x3f   : > { %250 = vmatpush1.bf16.msra.mxu0 %v244_v6  ;;  %v231_v7 = vld [vmem:[%s222_s21] sm:$0x3]  ;;  %p532_p8 = scmp.ne.s32.totalorder %s775_s28, %s531_s9  ;;  %p834_p11 = scmp.ne.s32.totalorder %s829_s25, 0 }
  0x40   : > { %s617_s15 = smov [#allocation5]  }
  0x41   : > { %p533_p0 = pnand %p532_p8, %p834_p11  ;;  %s535_s7 = sshll.u32 %s617_s15, 4  ;;  %s536_s7 = int_to_ptr.vmem [resolvable:$false] %s535_s7 }
  0x42   : > { %428 = vmatmul.mubr.msk.bf16.vlgmr.msra.gmra.mrb[0].mxu0 %vm238_vm1, %v231_v7  ;;  %s537_s6 = scalar_lea.vmem %s536_s7, 256  ;;  %p538_p13 = scmp.lt.s32.totalorder %s775_s28, %s536_s7 }
  0x43   : > { %p534_p7 = pneg %p533_p0  ;;  %p539_p3 = scmp.lt.s32.totalorder %s537_s6, %s531_s9 }
  0x45   : > { %p540_p6 = por %p539_p3, %p538_p13 }
  0x47   : > { %p541_p4 = pnand %p540_p6, %p534_p7 }
  0xba   : > { %v236_v8 = vpop.permute.xlu0 %235 }
 0x115   : > { %v283_v9 = vpop.f32.mrb[0].mxu0 }
 0x116   : > { %v284_v10 = vadd.f32 %v283_v9, %v236_v8  ;;  %v285_v11 = vpop.f32.mrb[1].mxu0 }
 0x117   : > { %v286_v12 = vadd.f32 %v285_v11, %v236_v8  ;;  %v287_v13 = vpop.f32.mrb[2].mxu0 }
 0x118   : > { %v290_v14 = vadd.f32 3.0, %v284_v10  ;;  %v288_v15 = vpop.f32.mrb[3].mxu0 }
 0x119   : > { %v291_v16 = vadd.f32 3.0, %v286_v12 }
 0x11a   : > { %v292_v17 = vmul.f32 0.16666667, %v290_v14 }
 0x11b   : > { %v293_v18 = vmul.f32 0.16666667, %v291_v16 }
 0x11c   : > { %v294_v19 = vmax.f32 %v292_v17, 0.0 }
 0x11d   : > { %v295_v20 = vmax.f32 %v293_v18, 0.0 }
 0x11e   : > { %v296_v21 = vmin.f32 %v294_v19, 1.0 }
 0x11f   : > { %v297_v22 = vmin.f32 %v295_v20, 1.0 }
 0x121   : > { %v300_v23 = vcombine.low %v296_v21, %v297_v22 }
 0x123   : > { %302 = vst [vmem:[%s217_s23] sm:$0xff] %v300_v23 }
 0x124   : > { %544 = shalt.err (!%p541_p4)
}
 0x125   : > { %s545_s5 = scalar_lea.hbm %s773_s4, 128  ;;  %s549_s18 = scalar_lea.hbm %s825_s3, 256 }
 0x126   : > { %p546_p10 = scmp.ne.s32.totalorder %s773_s4, %s545_s5  ;;  %p550_p2 = scmp.lt.u32.totalorder %s773_s4, %s825_s3 }
 0x127   : > { %p551_p5 = scmp.lt.u32.totalorder %s549_s18, %s545_s5  ;;  %p553_p8 = scmp.lt.u32.totalorder %s545_s5, %s773_s4 }
 0x128   : > { %p547_p12 = pnand %p546_p10, %p834_p11 }
 0x129   : > { %p552_p9 = por %p551_p5, %p550_p2 }
 0x12a   : > { %p548_p1 = pneg %p547_p12 }
 0x12b   : > { %p554_p0 = por %p553_p8, %p552_p9 }
 0x12d   : > { %p555_p7 = pnand %p554_p0, %p548_p1 }
 0x12f   : > { %558 = shalt.err (!%p555_p7)
}
 0x130   : > { %438 = dma.vmem_to_hbm [thread:$0]  (%p834_p11), %s775_s28, 128, %s773_s4, %s304_s11  }
 0x131 PF: > { %s332_s21 = sand.u32 1, %s593_s12   ;;  %p835_p13 = scmp.ne.s32.totalorder %s830_s27, 0 }
 0x132   : > { %p836_p3 = scmp.ge.s32.totalorder %s613_s17, 2  ;;  %s333_s22 = scalar_lea.sflag [#allocation4], %s332_s21 }
 0x134   : > { %p445_p6 = pnand %p836_p3, %p835_p13 }
 0x136   : > { %588 = dma.done.wait (!%p445_p6), %s333_s22, 128  }
 0x137   : > { %590 = vsyncadd (!%p445_p6), %s333_s22, 4294967168  ;;  %s19_s17 = sadd.s32 1, %s613_s17   ;;  %s837_s12 = smov %s597_s13 }
 0x138   : > { %p16_p4 = scmp.ge.s32.totalorder %s19_s17, 4   ;;  %s838_s13 = smov %s601_s14 }
 0x139   : > { %s839_s14 = smov %s694_s26  ;;  %s840_s15 = smov %s609_s16 }
 0x13a   : > { %s841_s16 = smov %s843_s20  ;;  %18 = sbr.rel (!%p16_p4) target bundleno = 6 (0x6), region = 80 }
 0x141   :  { %338 = vsyncpa [#allocation3], 1 }
 0x142   :  { %340 = vsyncpa [#allocation3 + $0x1], 1 }
 0x143   :  { %341 = vsyncpa [#allocation4], 1 }
 0x144   :  { %343 = vsyncpa [#allocation4 + $0x1], 1 }

</bundles_post_ra>
